<compile_context>
chip_gen: v7x
topology: tpu7x:2x2x1
jax: 0.10.0
libtpu: 0.0.40
codegen_flags: <defaults>
</compile_context>

<pallas_src>
import jax
import jax.numpy as jnp
from jax.experimental import pallas as pl
from jax.experimental.pallas import tpu as pltpu


def _conv1x1_kernel(w_ref, x_ref, o_ref):
    # w_ref: (C_out, C_in) f32 in SMEM  -> cheap scalar reads
    # x_ref: (1, C_in, TILE) in VMEM    -> lane-dense rows
    # o_ref: (1, C_out, TILE) in VMEM
    c_out, c_in = w_ref.shape
    # Load each input-channel row exactly once (full-width vector loads).
    x_rows = [x_ref[0, c:c + 1, :].astype(jnp.float32) for c in range(c_in)]
    for o in range(c_out):
        acc = x_rows[0] * w_ref[o, 0]
        for c in range(1, c_in):
            acc = acc + x_rows[c] * w_ref[o, c]
        # Full-128-lane (unmasked) store, one output channel row per store.
        o_ref[0, o:o + 1, :] = acc.astype(o_ref.dtype)


def _round_up(a, b):
    return ((a + b - 1) // b) * b


def conv1x1_pallas(x_nchw, weight_oihw, *, max_tile=32 * 1024):
    """1x1 conv, no bias. x_nchw: (N, C_in, H, W), weight: (C_out, C_in, 1, 1)."""
    n, c_in, h, w = x_nchw.shape
    c_out = weight_oihw.shape[0]
    hw = h * w

    # Free reshapes (no data movement): keep NCHW order, spatial axis on lanes.
    x3 = x_nchw.reshape(n, c_in, hw)
    w_mat = weight_oihw.reshape(c_out, c_in).astype(jnp.float32)  # kernel is 1x1

    # Lane tile: multiple of 128, capped so (C_in + C_out) * tile * 4B * 2 bufs
    # stays far below even v7x's 64 MiB VMEM while amortizing per-step overhead.
    tile = min(_round_up(hw, 128), max_tile)
    hw_pad = _round_up(hw, tile)
    if hw_pad != hw:
        x3 = jnp.pad(x3, ((0, 0), (0, 0), (0, hw_pad - hw)))

    grid = (n, hw_pad // tile)

    out3 = pl.pallas_call(
        _conv1x1_kernel,
        out_shape=jax.ShapeDtypeStruct((n, c_out, hw_pad), x_nchw.dtype),
        grid_spec=pltpu.PrefetchScalarGridSpec(
            num_scalar_prefetch=0,
            grid=grid,
            in_specs=[
                # 6 weight scalars live once in SMEM (no per-tile DMA).
                pl.BlockSpec(memory_space=pltpu.MemorySpace.SMEM),
                # Lane-dense spatial tile; full C_in on the sublane axis.
                pl.BlockSpec((1, c_in, tile), lambda b, t: (b, 0, t)),
            ],
            out_specs=pl.BlockSpec((1, c_out, tile), lambda b, t: (b, 0, t)),
        ),
        compiler_params=pltpu.CompilerParams(
            # No cross-step reduction: both grid axes are independent.
            dimension_semantics=("parallel", "parallel"),
        ),
    )(w_mat, x3)

    if hw_pad != hw:
        out3 = out3[:, :, :hw]
    return out3.reshape(n, c_out, h, w)


if __name__ == "__main__":
    # Module name implies in_channels=3, out_channels=2.
    N, C_IN, C_OUT, H, W = 2, 3, 2, 16, 16

    key = jax.random.PRNGKey(0)
    kx, kw = jax.random.split(key)
    x = jax.random.normal(kx, (N, C_IN, H, W), dtype=jnp.float32)
    # Conv2d weight shape: (C_out, C_in, 1, 1), no bias.
    weight = jax.random.normal(kw, (C_OUT, C_IN, 1, 1), dtype=jnp.float32) * 0.1

    out = conv1x1_pallas(x, weight)
    out = jax.block_until_ready(out)

    # Reference check (plain JAX): same semantics as torch.nn.Conv2d(3,2,1,bias=False).
    ref = jnp.einsum("nchw,oc->nohw", x, weight[:, :, 0, 0])
    assert out.shape == (N, C_OUT, H, W)
    assert jnp.allclose(out, ref, atol=1e-5, rtol=1e-5)

    print("KERNEL_OK")
</pallas_src>

<mosaic_0001>
module attributes {stable_mosaic.version = 11 : i64} {
  func.func @_conv1x1_kernel(%arg0: i32, %arg1: i32, %arg2: memref<2x3xf32, #tpu.memory_space<smem>>, %arg3: memref<1x3x256xf32, #tpu.memory_space<vmem>>, %arg4: memref<1x2x256xf32, #tpu.memory_space<vmem>>) attributes {dimension_semantics = [#tpu.dimension_semantics<parallel>, #tpu.dimension_semantics<parallel>], iteration_bounds = array<i64: 2, 1>, scalar_prefetch = 0 : i64, scratch_operands = 0 : i64, tpu.core_type = #tpu.core_type<tc>, window_params = [{transform_indices = @transform_0, window_bounds = array<i64: 2, 3>}, {transform_indices = @transform_1, window_bounds = array<i64: 1, 3, 256>}, {transform_indices = @transform_2, window_bounds = array<i64: 1, 2, 256>}]} {
    %c0 = arith.constant 0 : index
    %c0_0 = arith.constant 0 : index
    %c0_1 = arith.constant 0 : index
    %0 = vector.load %arg3[%c0, %c0_0, %c0_1] : memref<1x3x256xf32, #tpu.memory_space<vmem>>, vector<1x1x256xf32>
    %1 = vector.shape_cast %0 : vector<1x1x256xf32> to vector<1x256xf32>
    %c0_2 = arith.constant 0 : index
    %c1 = arith.constant 1 : index
    %c0_3 = arith.constant 0 : index
    %2 = vector.load %arg3[%c0_2, %c1, %c0_3] : memref<1x3x256xf32, #tpu.memory_space<vmem>>, vector<1x1x256xf32>
    %3 = vector.shape_cast %2 : vector<1x1x256xf32> to vector<1x256xf32>
    %c0_4 = arith.constant 0 : index
    %c2 = arith.constant 2 : index
    %c0_5 = arith.constant 0 : index
    %4 = vector.load %arg3[%c0_4, %c2, %c0_5] : memref<1x3x256xf32, #tpu.memory_space<vmem>>, vector<1x1x256xf32>
    %5 = vector.shape_cast %4 : vector<1x1x256xf32> to vector<1x256xf32>
    %c0_6 = arith.constant 0 : index
    %c0_7 = arith.constant 0 : index
    %6 = memref.load %arg2[%c0_6, %c0_7] : memref<2x3xf32, #tpu.memory_space<smem>>
    %7 = vector.broadcast %6 : f32 to vector<1x256xf32>
    %8 = arith.mulf %1, %7 : vector<1x256xf32>
    %c0_8 = arith.constant 0 : index
    %c1_9 = arith.constant 1 : index
    %9 = memref.load %arg2[%c0_8, %c1_9] : memref<2x3xf32, #tpu.memory_space<smem>>
    %10 = vector.broadcast %9 : f32 to vector<1x256xf32>
    %11 = arith.mulf %3, %10 : vector<1x256xf32>
    %12 = arith.addf %8, %11 : vector<1x256xf32>
    %c0_10 = arith.constant 0 : index
    %c2_11 = arith.constant 2 : index
    %13 = memref.load %arg2[%c0_10, %c2_11] : memref<2x3xf32, #tpu.memory_space<smem>>
    %14 = vector.broadcast %13 : f32 to vector<1x256xf32>
    %15 = arith.mulf %5, %14 : vector<1x256xf32>
    %16 = arith.addf %12, %15 : vector<1x256xf32>
    %c0_12 = arith.constant 0 : index
    %c0_13 = arith.constant 0 : index
    %c0_14 = arith.constant 0 : index
    %17 = vector.load %arg4[%c0_12, %c0_13, %c0_14] : memref<1x2x256xf32, #tpu.memory_space<vmem>>, vector<1x1x256xf32>
    %18 = vector.shape_cast %17 : vector<1x1x256xf32> to vector<1x256xf32>
    %19 = vector.shape_cast %16 : vector<1x256xf32> to vector<1x1x256xf32>
    tpu.vector_store %arg4[%c0_12, %c0_13, %c0_14], %19 {strides = array<i32>} : memref<1x2x256xf32, #tpu.memory_space<vmem>>, vector<1x1x256xf32>,
    %c1_15 = arith.constant 1 : index
    %c0_16 = arith.constant 0 : index
    %20 = memref.load %arg2[%c1_15, %c0_16] : memref<2x3xf32, #tpu.memory_space<smem>>
    %21 = vector.broadcast %20 : f32 to vector<1x256xf32>
    %22 = arith.mulf %1, %21 : vector<1x256xf32>
    %c1_17 = arith.constant 1 : index
    %c1_18 = arith.constant 1 : index
    %23 = memref.load %arg2[%c1_17, %c1_18] : memref<2x3xf32, #tpu.memory_space<smem>>
    %24 = vector.broadcast %23 : f32 to vector<1x256xf32>
    %25 = arith.mulf %3, %24 : vector<1x256xf32>
    %26 = arith.addf %22, %25 : vector<1x256xf32>
    %c1_19 = arith.constant 1 : index
    %c2_20 = arith.constant 2 : index
    %27 = memref.load %arg2[%c1_19, %c2_20] : memref<2x3xf32, #tpu.memory_space<smem>>
    %28 = vector.broadcast %27 : f32 to vector<1x256xf32>
    %29 = arith.mulf %5, %28 : vector<1x256xf32>
    %30 = arith.addf %26, %29 : vector<1x256xf32>
    %c0_21 = arith.constant 0 : index
    %c1_22 = arith.constant 1 : index
    %c0_23 = arith.constant 0 : index
    %31 = vector.load %arg4[%c0_21, %c1_22, %c0_23] : memref<1x2x256xf32, #tpu.memory_space<vmem>>, vector<1x1x256xf32>
    %32 = vector.shape_cast %31 : vector<1x1x256xf32> to vector<1x256xf32>
    %33 = vector.shape_cast %30 : vector<1x256xf32> to vector<1x1x256xf32>
    tpu.vector_store %arg4[%c0_21, %c1_22, %c0_23], %33 {strides = array<i32>} : memref<1x2x256xf32, #tpu.memory_space<vmem>>, vector<1x1x256xf32>,
    return
  }
  func.func @transform_0(%arg0: i32, %arg1: i32) -> (i32, i32) {
    %c0_i32 = arith.constant 0 : i32
    %c0_i32_0 = arith.constant 0 : i32
    %c0_i32_1 = arith.constant 0 : i32
    return %c0_i32, %c0_i32_0 : i32, i32
  }
  func.func @transform_1(%arg0: i32, %arg1: i32) -> (i32, i32, i32) {
    %c0_i32 = arith.constant 0 : i32
    %c0_i32_0 = arith.constant 0 : i32
    return %arg0, %c0_i32, %arg1 : i32, i32, i32
  }
  func.func @transform_2(%arg0: i32, %arg1: i32) -> (i32, i32, i32) {
    %c0_i32 = arith.constant 0 : i32
    %c0_i32_0 = arith.constant 0 : i32
    return %arg0, %c0_i32, %arg1 : i32, i32, i32
  }
}

</mosaic_0001>

<bundles_post_ra>
// kernel: tpu_custom_call.1
= control target key start
LH: loop header
LB: loop body
LE: loop exit
PB: predicated region body
PF: predicated region fallthrough
CT: control target
= control target key end

     0   :  { %7 = vsyncpa [#allocation4], 0  ;;  %s678_s0 = inlined_call_operand.vmem [shape: f32[2,3], index: 0, kind: input, shape index: {}]   ;;  %s679_s1 = inlined_call_operand.vmem [shape: f32[2,3,256], index: 1, kind: input, shape index: {}]   ;;  %s680_s2 = inlined_call_operand.hbm [shape: f32[2,2,256], index: 2, kind: output, shape index: {}]  }
   0x1   :  { %8 = vsyncpa [#allocation3], 0 }
   0x2   :  { %10 = vsyncpa [#allocation3 + $0x1], 0  ;;  %s533_s9 = smov 0   ;;  %s535_s10 = smov 0  }
   0x3   :  { %s537_s11 = smov 0   ;;  %s539_s12 = smov 0  }
   0x4   :  { %s541_s13 = smov 0   ;;  %s543_s14 = smov 0  }
   0x5 LB: > { %s326_s15 = sadd.s32 4294967295, %s514_s14   ;;  %s327_s16 = sadd.s32 4294967294, %s514_s14   ;;  %s514_s14 = sphi %s543_s14, %s16_s14   ;;  %s510_s13 = sphi %s541_s13, %s691_s13   ;;  %s506_s12 = sphi %s539_s12, %s690_s12   ;;  %s502_s11 = sphi %s537_s11, %s689_s11   ;;  %s498_s10 = sphi %s535_s10, %s688_s10   ;;  %s494_s9 = sphi %s533_s9, %s687_s9  }
   0x6   : > { %s28_s17 = sadd.s32 1, %s510_s13  ;;  %s86_s18 = sadd.s32 1, %s502_s11 }
   0x7   : > { %p30_p0 = scmp.ge.s32.totalorder %s28_s17, 2  ;;  %p96_p1 = scmp.ne.s32.totalorder %s502_s11, %s498_s10 }
   0x8   : > { %p97_p2 = scmp.eq.s32.totalorder %s326_s15, 1  ;;  %p102_p3 = scmp.ne.s32.totalorder %s498_s10, %s494_s9 }
   0x9   : > { %s693_s17 = smov (%p30_p0, %s28_s17), 0  ;;  %p103_p5 = scmp.eq.s32.totalorder %s327_s16, 1 }
   0xa   : > { %p573_p4 = por %p97_p2, %p96_p1  ;;  %s81_s20 = ssub.s32 %s510_s13, %s693_s17 }
   0xb   : > { %p328_p6 = scmp.ge.s32.totalorder %s514_s14, 1  ;;  %p84_p7 = scmp.eq.s32.totalorder %s81_s20, 0 }
   0xc   : > { %p580_p8 = por %p103_p5, %p102_p3  ;;  %p110_p9 = scmp.lt.s32.totalorder %s514_s14, 3 }
   0xd   : > { %s586_s22 = scalar_select %p84_p7, %s502_s11, %s86_s18  }
   0xe   : > { %p588_p10 = pnand %p328_p6, %p110_p9  ;;  %p592_p11 = scmp.eq.s32.totalorder %s326_s15, 0 }
   0xf   : > { %s123_s27 = sshll.u32 %s678_s0, 4  ;;  %s124_s27 = int_to_ptr.vmem [resolvable:$true] %s123_s27 }
  0x10   : > { %p357_p12 = pneg %p588_p10  ;;  %s417_s28 = scalar_lea.vmem %s124_s27, 32 }
  0x11   : > { %p418_p0 = scmp.ne.s32.totalorder %s124_s27, %s417_s28  ;;  %p425_p5 = scmp.lt.s32.totalorder %s124_s27, %s124_s27 }
  0x12   : > { %p358_p13 = pnand %p592_p11, %p357_p12  ;;  %p426_p6 = scmp.lt.s32.totalorder %s417_s28, %s417_s28 }
  0x14   : > { %p419_p1 = pneg %p358_p13  ;;  %p427_p7 = por %p426_p6, %p425_p5 }
  0x16   : > { %p420_p2 = pnand %p419_p1, %p418_p0 }
  0x18   : > { %p421_p3 = pneg %p420_p2 }
  0x1a   : > { %p428_p9 = pnand %p427_p7, %p421_p3 }
  0x1c   : > { %431 = shalt.err (!%p428_p9)
}
  0x1d   : > { %s516_s29 = smov [#allocation2]   ;;  %149 = sbr.rel (%p588_p10) target bundleno = 71 (0x47), region = 28 }
  0x1e   : > { %360 = dma.vmem_to_smem (!%p358_p13), %s124_s27, 32, %s516_s29, [#allocation4]  }
  0x24   : > { %485 = dma.done.wait (%p592_p11), [#allocation4], 32  }
  0x25   : > { %487 = vsyncadd (%p592_p11), [#allocation4], 4294967264 }
  0x26   : > { %155 = sfence }
  0x27   : > { %p177_p12 = scmp.lt.s32.totalorder %s506_s12, 1  ;;  %s192_s30 = sld [smem:[#allocation2]]  ;;  %v203_v6 = vlaneseq }
  0x28   : > { %s338_s3 = sld [smem:[#allocation2 + $0x1]]  ;;  %s339_s5 = sld [smem:[#allocation2 + $0x2]] }
  0x29   : > { %s178_s4 = scalar_select %p177_p12, %s506_s12, 1  ;;  %vm617_vm0 = vcmp.lt.s32.totalorder %v203_v6, 256 }
  0x2a   : > { %s173_s6 = sand.u32 1, %s498_s10   ;;  %s340_s20 = sld [smem:[#allocation2 + $0x80]] }
  0x2b   : > { %s349_s7 = sshll.u32 %s178_s4, 3  ;;  %s333_s18 = sshll.u32 %s173_s6, 2 }
  0x2c   : > { %s184_s16 = scalar_lea.vmem %s679_s1, %s349_s7  ;;  %s341_s23 = sld [smem:[#allocation2 + $0x81]] }
  0x2d   : > { %v187_v0 = vld [vmem:[%s184_s16] ss:$4 sm:$0x3]  ;;  %v336_v1 = vld [vmem:[%s184_s16 + $0x1] ss:$4 sm:$0x3]  ;;  %v193_v2 = vstv %s192_s30 }
  0x2e   : > { %v337_v3 = vld [vmem:[%s184_s16 + $0x2] ss:$4 sm:$0x3]  ;;  %v194_v4 = vmul.f32 %v193_v2, %v187_v0  ;;  %v196_v5 = vstv %s338_s3  ;;  %s342_s24 = sld [smem:[#allocation2 + $0x82]]  ;;  %v200_v8 = vstv %s339_s5  ;;  %s175_s25 = scalar_lea.vmem [#allocation5], %s333_s18 }
  0x2f   : > { %v197_v7 = vmul.f32 %v336_v1, %v196_v5  ;;  %v201_v10 = vmul.f32 %v337_v3, %v200_v8  ;;  %s238_s26 = sshll.u32 %s175_s25, 4  ;;  %s350_s27 = sshll.u32 %s506_s12, 6  ;;  %s624_s26 = int_to_ptr.vmem [resolvable:$true] %s238_s26 }
  0x30   : > { %v209_v13 = vstv %s340_s20  ;;  %s629_s30 = scalar_lea.hbm %s680_s2, %s350_s27  ;;  %s222_s3 = scalar_lea.sflag [#allocation3], %s173_s6 }
  0x31   : > { %v198_v9 = vadd.f32 %v197_v7, %v194_v4  ;;  %v210_v14 = vmul.f32 %v209_v13, %v187_v0  ;;  %s432_s4 = scalar_lea.vmem %s624_s26, 64  ;;  %s517_s12 = smov [#allocation5]  }
  0x32   : > { %v212_v15 = vstv %s341_s23  ;;  %p433_p10 = scmp.ne.s32.totalorder %s624_s26, %s432_s4  ;;  %s436_s5 = sshll.u32 %s517_s12, 4  ;;  %s437_s5 = int_to_ptr.vmem [resolvable:$false] %s436_s5 }
  0x33   : > { %v202_v12 = vadd.f32 %v201_v10, %v198_v9  ;;  %v213_v17 = vmul.f32 %v336_v1, %v212_v15  ;;  %s438_s7 = scalar_lea.vmem %s437_s5, 128  ;;  %p439_p0 = scmp.lt.s32.totalorder %s624_s26, %s437_s5 }
  0x34   : > { %v216_v16 = vstv %s342_s24  ;;  %p434_p11 = pnand %p433_p10, %p573_p4  ;;  %p440_p1 = scmp.lt.s32.totalorder %s438_s7, %s432_s4 }
  0x35   : > { %207 = vst.msk [vmem:[%s175_s25] ss:$2 sm:$0x3] %vm617_vm0, %v202_v12  ;;  %v217_v18 = vmul.f32 %v337_v3, %v216_v16  ;;  %v214_v19 = vadd.f32 %v213_v17, %v210_v14 }
  0x36   : > { %p435_p13 = pneg %p434_p11  ;;  %p441_p2 = por %p440_p1, %p439_p0 }
  0x37   : > { %v218_v20 = vadd.f32 %v217_v18, %v214_v19 }
  0x38   : > { %p442_p3 = pnand %p441_p2, %p435_p13 }
  0x39   : > { %343 = vst.msk [vmem:[%s175_s25 + $0x1] ss:$2 sm:$0x3] %vm617_vm0, %v218_v20 }
  0x3a   : > { %445 = shalt.err (!%p442_p3)
}
  0x3b   : > { %s446_s6 = scalar_lea.hbm %s629_s30, 64  ;;  %s450_s16 = scalar_lea.hbm %s680_s2, 128 }
  0x3c   : > { %p447_p5 = scmp.ne.s32.totalorder %s629_s30, %s446_s6  ;;  %p451_p9 = scmp.lt.u32.totalorder %s629_s30, %s680_s2 }
  0x3d   : > { %p452_p12 = scmp.lt.u32.totalorder %s450_s16, %s446_s6  ;;  %p454_p11 = scmp.lt.u32.totalorder %s446_s6, %s629_s30 }
  0x3e   : > { %p448_p6 = pnand %p447_p5, %p573_p4 }
  0x3f   : > { %p453_p10 = por %p452_p12, %p451_p9 }
  0x40   : > { %p449_p7 = pneg %p448_p6 }
  0x41   : > { %p455_p13 = por %p454_p11, %p453_p10 }
  0x43   : > { %p456_p0 = pnand %p455_p13, %p449_p7 }
  0x45   : > { %459 = shalt.err (!%p456_p0)
}
  0x46   : > { %355 = dma.vmem_to_hbm [thread:$0]  (%p573_p4), %s624_s26, 64, %s629_s30, %s222_s3  }
  0x47 PF: > { %p367_p1 = scmp.ge.s32.totalorder %s514_s14, 2  ;;  %s250_s23 = sand.u32 1, %s494_s9  }
  0x48   : > { %s251_s24 = scalar_lea.sflag [#allocation3], %s250_s23 }
  0x49   : > { %p362_p2 = pnand %p367_p1, %p580_p8 }
  0x4b   : > { %489 = dma.done.wait (!%p362_p2), %s251_s24, 64  }
  0x4c   : > { %491 = vsyncadd (!%p362_p2), %s251_s24, 4294967232  ;;  %s16_s14 = sadd.s32 1, %s514_s14   ;;  %s687_s9 = smov %s498_s10 }
  0x4d   : > { %p13_p3 = scmp.ge.s32.totalorder %s16_s14, 4   ;;  %s688_s10 = smov %s502_s11 }
  0x4e   : > { %s689_s11 = smov %s586_s22  ;;  %s690_s12 = smov %s510_s13 }
  0x4f   : > { %s691_s13 = smov %s693_s17  ;;  %15 = sbr.rel (!%p13_p3) target bundleno = 5 (0x5), region = 71 }
  0x56   :  { %256 = vsyncpa [#allocation3], 1 }
  0x57   :  { %258 = vsyncpa [#allocation3 + $0x1], 1 }
  0x58   :  { %259 = vsyncpa [#allocation4], 1 }
  0x59   :  { %261 = vsyncpa [#allocation4 + $0x1], 1 }

</bundles_post_ra>
